<compile_context>
chip_gen: v5e
topology: v5e:2x2
jax: 0.10.0
libtpu: 0.0.40
codegen_flags: <defaults>
</compile_context>

<pallas_src>
import math

import jax
import jax.numpy as jnp
from jax.experimental import pallas as pl
from jax.experimental.pallas import tpu as pltpu


def _layer_scale_kernel(x_ref, gamma_ref, o_ref):
    # (tile_rows, lane_dim) * (1, lane_dim) -> broadcast vmul on the VPU.
    o_ref[...] = (x_ref[...] * gamma_ref[...]).astype(o_ref.dtype)


def _sublane_pack(dtype) -> int:
    # Min sublane packing per dtype: f32 -> 8, bf16/f16 -> 16, int8/fp8 -> 32.
    return {1: 32, 2: 16, 4: 8}.get(jnp.dtype(dtype).itemsize, 8)


_MIB = 1024 * 1024
_SINGLE_BLOCK_MAX_BYTES = int(1.5 * _MIB)  # below this a single block is fine
_MIN_GRID_STEPS = 4                        # >= 2 steps per TC on v7x megacore


def _vmem_capacity_bytes() -> int:
    try:
        return int(pltpu.get_tpu_info().vmem_capacity_bytes)
    except Exception:  # pragma: no cover - defensive (interpret mode, etc.)
        return 128 * _MIB


def _target_tile_bytes(vmem_cap: int) -> int:
    # v7x has 64 MiB VMEM per TC -> smaller tiles; v5e/v6e (128 MiB) keep 8 MiB.
    return 4 * _MIB if vmem_cap <= 64 * _MIB else 8 * _MIB


def layer_scale(x: jax.Array, gamma: jax.Array, *,
                tile_rows: int | None = None,
                donate_x: bool = False) -> jax.Array:
    """Computes x * gamma (gamma broadcast over leading dims), like timm LayerScale."""
    orig_shape = x.shape
    dim = orig_shape[-1]
    assert gamma.shape == (dim,), f"gamma shape {gamma.shape} != ({dim},)"

    # Deliberate numerics choice: keep the multiply a single same-dtype vmul
    # (no hidden f32 upcast of bf16 activations).
    gamma = gamma.astype(x.dtype)

    rows = math.prod(orig_shape[:-1]) if len(orig_shape) > 1 else 1

    # Lane-dense layout: fold consecutive rows into the lane axis so the lane
    # width becomes a multiple of 128 and stores are unmasked full-lane vst.
    fold = 128 // math.gcd(dim, 128)
    if fold > 1 and rows % fold != 0:
        fold = 1  # ragged fallback (masked stores) — correct, just slower
    lane_dim = dim * fold
    rows_f = rows // fold

    x2d = x.reshape(rows_f, lane_dim)
    gamma_lane = jnp.tile(gamma, fold) if fold > 1 else gamma
    gamma2d = gamma_lane.reshape(1, lane_dim)

    sub = _sublane_pack(x.dtype)
    itemsize = jnp.dtype(x.dtype).itemsize
    bytes_per_row = lane_dim * itemsize
    total_bytes = rows_f * bytes_per_row

    vmem_cap = _vmem_capacity_bytes()
    target_tile_bytes = _target_tile_bytes(vmem_cap)

    if tile_rows is None:
        if total_bytes <= _SINGLE_BLOCK_MAX_BYTES:
            # Tiny tensor: one full-extent block (always legal, no alignment
            # requirement when the block dim equals the array dim).
            tile_rows = rows_f
        else:
            # Rows that fit the byte target, then cap so the grid has at least
            # _MIN_GRID_STEPS blocks (>= 2 per TensorCore on v7x).
            t = target_tile_bytes // bytes_per_row
            t = min(t, rows_f // _MIN_GRID_STEPS)
            tile_rows = max(sub, (t // sub) * sub)  # dtype-aligned sublanes
            if tile_rows >= rows_f:
                tile_rows = rows_f
    else:
        assert tile_rows == rows_f or tile_rows % sub == 0, (
            f"tile_rows={tile_rows} must be a multiple of {sub} for dtype {x.dtype}"
        )

    grid = (pl.cdiv(rows_f, tile_rows),)

    # VMEM budget: double-buffered x + out tiles, plus resident gamma + slack.
    tile_bytes = tile_rows * bytes_per_row
    vmem_needed = 2 * 2 * tile_bytes + lane_dim * itemsize + 2 * _MIB
    vmem_limit = min(max(32 * _MIB, vmem_needed), (vmem_cap * 3) // 4)

    cost = pl.CostEstimate(
        flops=rows * dim,
        transcendentals=0,
        bytes_accessed=2 * rows * dim * itemsize + dim * itemsize,
    )

    out = pl.pallas_call(
        _layer_scale_kernel,
        out_shape=jax.ShapeDtypeStruct((rows_f, lane_dim), x.dtype),
        grid_spec=pltpu.PrefetchScalarGridSpec(
            num_scalar_prefetch=0,
            grid=grid,
            in_specs=[
                pl.BlockSpec((tile_rows, lane_dim), lambda i: (i, 0)),
                pl.BlockSpec((1, lane_dim), lambda i: (0, 0)),  # gamma resident
            ],
            out_specs=pl.BlockSpec((tile_rows, lane_dim), lambda i: (i, 0)),
        ),
        compiler_params=pltpu.CompilerParams(
            dimension_semantics=("parallel",),
            vmem_limit_bytes=int(vmem_limit),
        ),
        cost_estimate=cost,
        # Mirrors the PyTorch inplace=True path: reuse x's buffer for the
        # output when the caller donates x.
        input_output_aliases=({0: 0} if donate_x else {}),
    )(x2d, gamma2d)

    return out.reshape(orig_shape)


if __name__ == "__main__":
    key = jax.random.PRNGKey(0)
    init_values = 1e-5

    # 1) Small shape consistent with the module's forward: (batch, seq, dim).
    #    dim=32 exercises the lane-dense fold (fold = 128 // gcd(32,128) = 4).
    batch, seq, dim = 2, 8, 32
    x = jax.random.normal(key, (batch, seq, dim), dtype=jnp.float32)
    gamma = init_values * jnp.ones((dim,), dtype=jnp.float32)
    out = jax.block_until_ready(layer_scale(x, gamma))
    ref = x * gamma
    assert out.shape == x.shape and out.dtype == x.dtype
    assert jnp.allclose(out, ref, atol=0, rtol=0), "f32 mismatch vs reference"

    # 2) bf16 input, dim >= 128 (full-lane path, no folding).
    key2 = jax.random.PRNGKey(1)
    x2 = jax.random.normal(key2, (3, 5, 256), dtype=jnp.bfloat16)
    gamma2 = init_values * jnp.ones((256,), dtype=jnp.float32)
    out2 = jax.block_until_ready(layer_scale(x2, gamma2))
    ref2 = x2 * gamma2.astype(jnp.bfloat16)
    assert out2.shape == x2.shape and out2.dtype == x2.dtype
    assert jnp.allclose(out2.astype(jnp.float32), ref2.astype(jnp.float32),
                        rtol=1e-2, atol=1e-8), "bf16 mismatch vs reference"

    # 3) Awkward dim (96): generalized gcd fold -> lane width 384 (unmasked vst).
    key3 = jax.random.PRNGKey(2)
    x3 = jax.random.normal(key3, (2, 8, 96), dtype=jnp.float32)
    gamma3 = init_values * jnp.ones((96,), dtype=jnp.float32)
    out3 = jax.block_until_ready(layer_scale(x3, gamma3))
    assert jnp.allclose(out3, x3 * gamma3, atol=0, rtol=0), "dim=96 mismatch"

    # 4) Medium tensor (8 MiB f32): exercises the >=4-step grid / pipelined path.
    key4 = jax.random.PRNGKey(3)
    x4 = jax.random.normal(key4, (8, 256, 1024), dtype=jnp.float32)
    gamma4 = init_values * jnp.ones((1024,), dtype=jnp.float32)
    out4 = jax.block_until_ready(layer_scale(x4, gamma4))
    assert jnp.allclose(out4, x4 * gamma4, atol=0, rtol=0), "medium-shape mismatch"

    print("KERNEL_OK")
</pallas_src>

<mosaic_0001>
module attributes {stable_mosaic.version = 11 : i64} {
  func.func @_layer_scale_kernel(%arg0: i32, %arg1: memref<4x128xf32, #tpu.memory_space<vmem>>, %arg2: memref<1x128xf32, #tpu.memory_space<vmem>>, %arg3: memref<4x128xf32, #tpu.memory_space<vmem>>) attributes {dimension_semantics = [#tpu.dimension_semantics<parallel>], iteration_bounds = array<i64: 1>, scalar_prefetch = 0 : i64, scratch_operands = 0 : i64, tpu.core_type = #tpu.core_type<tc>, window_params = [{transform_indices = @transform_0, window_bounds = array<i64: 4, 128>}, {pipeline_mode = #tpu.pipeline_mode<synchronous>, transform_indices = @transform_1, window_bounds = array<i64: 1, 128>}, {transform_indices = @transform_2, window_bounds = array<i64: 4, 128>}]} {
    %c0 = arith.constant 0 : index
    %c0_0 = arith.constant 0 : index
    %0 = vector.load %arg1[%c0, %c0_0] : memref<4x128xf32, #tpu.memory_space<vmem>>, vector<4x128xf32>
    %c0_1 = arith.constant 0 : index
    %c0_2 = arith.constant 0 : index
    %1 = vector.load %arg2[%c0_1, %c0_2] : memref<1x128xf32, #tpu.memory_space<vmem>>, vector<1x128xf32>
    %2 = vector.broadcast %1 : vector<1x128xf32> to vector<4x128xf32>
    %3 = arith.mulf %0, %2 : vector<4x128xf32>
    %c0_3 = arith.constant 0 : index
    %c0_4 = arith.constant 0 : index
    %4 = vector.load %arg3[%c0_3, %c0_4] : memref<4x128xf32, #tpu.memory_space<vmem>>, vector<4x128xf32>
    tpu.vector_store %arg3[%c0_3, %c0_4], %3 {strides = array<i32>} : memref<4x128xf32, #tpu.memory_space<vmem>>, vector<4x128xf32>,
    return
  }
  func.func @transform_0(%arg0: i32) -> (i32, i32) {
    %c0_i32 = arith.constant 0 : i32
    %c0_i32_0 = arith.constant 0 : i32
    return %arg0, %c0_i32 : i32, i32
  }
  func.func @transform_1(%arg0: i32) -> (i32, i32) {
    %c0_i32 = arith.constant 0 : i32
    %c0_i32_0 = arith.constant 0 : i32
    %c0_i32_1 = arith.constant 0 : i32
    return %c0_i32, %c0_i32_0 : i32, i32
  }
  func.func @transform_2(%arg0: i32) -> (i32, i32) {
    %c0_i32 = arith.constant 0 : i32
    %c0_i32_0 = arith.constant 0 : i32
    return %arg0, %c0_i32 : i32, i32
  }
}

</mosaic_0001>

<bundles_post_ra>
// kernel: tpu_custom_call.1
= control target key start
LH: loop header
LB: loop body
LE: loop exit
PB: predicated region body
PF: predicated region fallthrough
CT: control target
= control target key end

     0   :  { %7 = vsyncpa [#allocation3], 0  ;;  %s174_s0 = inlined_call_operand.hbm [shape: f32[4,128], index: 0, kind: input, shape index: {}]   ;;  %s175_s1 = inlined_call_operand.hbm [shape: f32[1,128], index: 1, kind: input, shape index: {}]   ;;  %s176_s2 = inlined_call_operand.hbm [shape: f32[4,128], index: 2, kind: output, shape index: {}]  }
   0x1   :  { %8 = vsyncpa [#allocation6], 0 }
   0x2   :  { %9 = vsyncpa [#allocation4], 0  ;;  %s15_s11 = sshll.u32 %s174_s0, 4  ;;  %s147_s12 = smov [#allocation2]   ;;  %s16_s11 = int_to_ptr.hbm [resolvable:$true] %s15_s11 }
   0x3   :  { %s17_s13 = sshll.u32 %s147_s12, 4  ;;  %s26_s16 = sshll.u32 %s175_s1, 4  ;;  %s18_s13 = int_to_ptr.vmem [resolvable:$true] %s17_s13  ;;  %s27_s16 = int_to_ptr.hbm [resolvable:$true] %s26_s16 }
   0x4   :  { %20 = dma.hbm_to_vmem [thread:$0]  %s16_s11, 64, %s18_s13, [#allocation3]  }
   0x5   :  { %s148_s17 = smov [#allocation5]  }
   0x6   :  { %s28_s18 = sshll.u32 %s148_s17, 4  ;;  %s29_s18 = int_to_ptr.vmem [resolvable:$true] %s28_s18 }
   0x7   :  { %31 = dma.hbm_to_vmem [thread:$0]  %s27_s16, 16, %s29_s18, [#allocation6]  }
   0x8   :  { %141 = dma.done.wait [#allocation3], 64  }
   0x9   :  { %142 = vsyncadd [#allocation3], 4294967232 }
   0xa   :  { %143 = dma.done.wait [#allocation6], 16  }
   0xb   :  { %144 = vsyncadd [#allocation6], 4294967280  ;;  %s149_s19 = smov [#allocation7]   ;;  %s54_s22 = sshll.u32 %s176_s2, 4  ;;  %v40_v0 = vld [vmem:[#allocation2] sm:$0xf]  ;;  %s55_s22 = int_to_ptr.hbm [resolvable:$true] %s54_s22 }
   0xc   :  { %s52_s0 = sshll.u32 %s149_s19, 4  ;;  %v68_v1 = vld [vmem:[#allocation5] ss:$0 sm:$0xff]  ;;  %s53_s0 = int_to_ptr.vmem [resolvable:$true] %s52_s0 }
   0xd   :  { %v45_v2 = vmul.f32 %v68_v1, %v40_v0 }
   0xf   :  { %46 = vst [vmem:[#allocation7] sm:$0xf] %v45_v2 }
  0x10   :  { %57 = dma.vmem_to_hbm [thread:$0]  %s53_s0, 64, %s55_s22, [#allocation4]  }
  0x11   :  { %145 = dma.done.wait [#allocation4], 64  }
  0x12   :  { %146 = vsyncadd [#allocation4], 4294967232 }
  0x13   :  { %62 = vsyncpa [#allocation3], 1 }
  0x14   :  { %63 = vsyncpa [#allocation6], 1 }
  0x15   :  { %64 = vsyncpa [#allocation4], 1 }

</bundles_post_ra>
